<compile_context>
chip_gen: v6e
topology: v6e:2x2x1
jax: 0.10.0
libtpu: 0.0.40
codegen_flags: <defaults>
</compile_context>

<pallas_src>
import functools

import jax
import jax.numpy as jnp
from jax.experimental import pallas as pl
from jax.experimental.pallas import tpu as pltpu


def encoder_kernel(x_ref, w1_ref, b1_ref, w2_ref, b2_ref, eps_ref,
                   z_ref, kl_ref, *, latent, valid_batch):
    """One batch tile: linear1 + ReLU -> fused to_mean_logvar -> KL partial -> z."""
    tb = x_ref.shape[0]

    # ---- linear1 + ReLU: bf16 MXU path, f32 accumulation ---------------------
    x = x_ref[...].astype(jnp.bfloat16)          # cast-on-load (free VPU work)
    h = jnp.dot(x, w1_ref[...], preferred_element_type=jnp.float32) + b1_ref[...]
    h = jnp.maximum(h, 0.0)

    # ---- fused to_mean_logvar: one (hidden, 2*latent) matmul -----------------
    out2 = jnp.dot(h, w2_ref[...], preferred_element_type=jnp.float32) + b2_ref[...]
    mu = out2[:, :latent]                        # lane slice of a (tb, 4) vreg
    lv = out2[:, latent:]

    # One exp per element: e = exp(log_var / 2);  exp(log_var) = e * e.
    e = jnp.exp(0.5 * lv)

    # ---- KL partial for this tile (mask rows that are batch padding) ---------
    rows = (pl.program_id(0) * tb
            + jax.lax.broadcasted_iota(jnp.int32, (tb, 1), 0))
    term = 1.0 + lv - mu * mu - e * e
    term = jnp.where(rows < valid_batch, term, 0.0)
    kl_ref[0, 0] = -0.5 * jnp.sum(term)          # SMEM scalar out

    # ---- reparametrization ----------------------------------------------------
    z_ref[...] = mu + e * eps_ref[...]


def _pick_batch_tile(batch):
    """Largest tile (<=512, multiple of 8); padding < one tile is masked in-kernel."""
    for tb in (512, 256, 128, 64, 32, 16, 8):
        if batch >= tb:
            return tb
    return 8


def encoder_forward(x, w1, b1, w2, b2, key):
    """VAE Encoder forward pass.  Returns (z, kl, eps).

    Weight layout is (in_features, out_features) -- the transpose of
    torch.nn.Linear.weight -- so the kernel computes plain `x @ W + b`.
    `eps` is the N(0,1) noise used for the reparametrization trick
    (torch.randn_like's exact stream cannot be reproduced, only its
    distribution), returned so callers/tests can verify z exactly.
    """
    batch = x.shape[0]
    x_flat = x.reshape(batch, -1)                # torch.flatten(x, start_dim=1)
    input_dim, hidden = w1.shape
    two_latent = w2.shape[1]
    latent = two_latent // 2
    # torch.split(.., 2, dim=-1) yields exactly (mu, log_var) only when
    # latent_dims == 2; any other value diverges from the torch module.
    assert latent == 2 and two_latent == 2 * latent, "Encoder requires latent_dims == 2"
    assert x_flat.shape[1] == input_dim, "flattened input does not match w1"

    tb = _pick_batch_tile(batch)
    num_tiles = pl.cdiv(batch, tb)
    padded = num_tiles * tb
    if padded != batch:
        x_flat = jnp.pad(x_flat, ((0, padded - batch), (0, 0)))

    # eps ~ N(0,1) (host-side jax.random: portable; padded rows are discarded).
    eps = jax.random.normal(key, (padded, latent), dtype=jnp.float32)

    # bf16 weights for the big matmul (native MXU path, half the resident VMEM).
    w1_bf16 = w1.astype(jnp.bfloat16)

    kernel = functools.partial(encoder_kernel, latent=latent, valid_batch=batch)

    flops = 2 * padded * input_dim * hidden + 2 * padded * hidden * two_latent
    bytes_accessed = (x_flat.size * 4 + w1_bf16.size * 2 + b1.size * 4
                      + w2.size * 4 + b2.size * 4 + eps.size * 4
                      + padded * latent * 4 + num_tiles * 4)

    z, kl_parts = pl.pallas_call(
        kernel,
        out_shape=(
            jax.ShapeDtypeStruct((padded, latent), jnp.float32),   # z
            jax.ShapeDtypeStruct((num_tiles, 1), jnp.float32),     # KL partials
        ),
        grid=(num_tiles,),
        in_specs=[
            pl.BlockSpec((tb, input_dim), lambda i: (i, 0)),          # x: batch-tiled
            pl.BlockSpec((input_dim, hidden), lambda i: (0, 0)),      # weights resident
            pl.BlockSpec((1, hidden), lambda i: (0, 0)),
            pl.BlockSpec((hidden, two_latent), lambda i: (0, 0)),
            pl.BlockSpec((1, two_latent), lambda i: (0, 0)),
            pl.BlockSpec((tb, latent), lambda i: (i, 0)),             # eps: batch-tiled
        ],
        out_specs=(
            pl.BlockSpec((tb, latent), lambda i: (i, 0)),             # z
            pl.BlockSpec((1, 1), lambda i: (i, 0),
                         memory_space=pltpu.MemorySpace.SMEM),        # kl partial
        ),
        compiler_params=pltpu.CompilerParams(
            dimension_semantics=("parallel",),        # shard batch tiles across TCs
            vmem_limit_bytes=32 * 1024 * 1024),       # explicit scoped-VMEM budget
        cost_estimate=pl.CostEstimate(flops=flops,
                                      transcendentals=padded * latent,
                                      bytes_accessed=bytes_accessed),
    )(x_flat, w1_bf16, b1, w2, b2, eps)

    return z[:batch], jnp.sum(kl_parts), eps[:batch]


def init_params(key, input_dim, hidden_dim, latent_dims):
    """Deterministic parameter init (Linear-like uniform(-1/sqrt(fan_in), +))."""
    k1, k2, k3, k4 = jax.random.split(key, 4)
    s1 = 1.0 / jnp.sqrt(input_dim)
    s2 = 1.0 / jnp.sqrt(hidden_dim)
    w1 = jax.random.uniform(k1, (input_dim, hidden_dim), jnp.float32, -s1, s1)
    b1 = jax.random.uniform(k2, (1, hidden_dim), jnp.float32, -s1, s1)
    w2 = jax.random.uniform(k3, (hidden_dim, 2 * latent_dims), jnp.float32, -s2, s2)
    b2 = jax.random.uniform(k4, (1, 2 * latent_dims), jnp.float32, -s2, s2)
    return w1, b1, w2, b2


def _reference(x, w1, b1, w2, b2, eps, latent_dims):
    """Pure-JAX reference matching the kernel's bf16 layer-1 precision."""
    x_flat = x.reshape(x.shape[0], -1)
    h = jnp.maximum(
        jnp.dot(x_flat.astype(jnp.bfloat16), w1.astype(jnp.bfloat16),
                preferred_element_type=jnp.float32) + b1, 0.0)
    out = jnp.dot(h, w2, preferred_element_type=jnp.float32) + b2
    mu, lv = out[:, :latent_dims], out[:, latent_dims:]
    kl = -0.5 * jnp.sum(1.0 + lv - mu * mu - jnp.exp(lv))
    z = mu + jnp.exp(lv / 2.0) * eps
    return z, kl


if __name__ == "__main__":
    # Small shapes consistent with the module (torch.split(.., 2) => latent_dims=2).
    B, C, H, W = 8, 1, 8, 8
    input_dim, hidden_dim, latent_dims = C * H * W, 128, 2

    key = jax.random.PRNGKey(0)
    kx, kp, ke1, ke2 = jax.random.split(key, 4)

    x = jax.random.normal(kx, (B, C, H, W), dtype=jnp.float32)
    w1, b1, w2, b2 = init_params(kp, input_dim, hidden_dim, latent_dims)

    fwd = jax.jit(encoder_forward)

    # --- case 1: batch divides the tile exactly --------------------------------
    z, kl, eps = fwd(x, w1, b1, w2, b2, ke1)
    jax.block_until_ready((z, kl, eps))
    z_ref, kl_ref = _reference(x, w1, b1, w2, b2, eps, latent_dims)
    assert z.shape == (B, latent_dims) and eps.shape == (B, latent_dims)
    assert bool(jnp.all(jnp.isfinite(z))), "z not finite"
    assert jnp.allclose(z, z_ref, atol=5e-3, rtol=5e-3), "z mismatch"
    assert jnp.allclose(kl, kl_ref, atol=5e-3, rtol=5e-3), "kl mismatch"

    # --- case 2: ragged batch (exercises padding + masked KL) -------------------
    B2 = 5
    x2 = x[:B2]
    z2, kl2, eps2 = jax.jit(encoder_forward)(x2, w1, b1, w2, b2, ke2)
    jax.block_until_ready((z2, kl2, eps2))
    z2_ref, kl2_ref = _reference(x2, w1, b1, w2, b2, eps2, latent_dims)
    assert z2.shape == (B2, latent_dims)
    assert jnp.allclose(z2, z2_ref, atol=5e-3, rtol=5e-3), "z mismatch (ragged)"
    assert jnp.allclose(kl2, kl2_ref, atol=5e-3, rtol=5e-3), "kl mismatch (ragged)"

    print("KERNEL_OK")
</pallas_src>

<mosaic_0001>
module attributes {stable_mosaic.version = 11 : i64} {
  func.func @encoder_kernel(%arg0: i32, %arg1: memref<8x64xf32, #tpu.memory_space<vmem>>, %arg2: memref<64x128xbf16, #tpu.memory_space<vmem>>, %arg3: memref<1x128xf32, #tpu.memory_space<vmem>>, %arg4: memref<128x4xf32, #tpu.memory_space<vmem>>, %arg5: memref<1x4xf32, #tpu.memory_space<vmem>>, %arg6: memref<8x2xf32, #tpu.memory_space<vmem>>, %arg7: memref<8x2xf32, #tpu.memory_space<vmem>>, %arg8: memref<1x1xf32, #tpu.memory_space<smem>>) attributes {dimension_semantics = [#tpu.dimension_semantics<parallel>], iteration_bounds = array<i64: 1>, scalar_prefetch = 0 : i64, scratch_operands = 0 : i64, tpu.core_type = #tpu.core_type<tc>, window_params = [{transform_indices = @transform_0, window_bounds = array<i64: 8, 64>}, {pipeline_mode = #tpu.pipeline_mode<synchronous>, transform_indices = @transform_1, window_bounds = array<i64: 64, 128>}, {pipeline_mode = #tpu.pipeline_mode<synchronous>, transform_indices = @transform_2, window_bounds = array<i64: 1, 128>}, {pipeline_mode = #tpu.pipeline_mode<synchronous>, transform_indices = @transform_3, window_bounds = array<i64: 128, 4>}, {pipeline_mode = #tpu.pipeline_mode<synchronous>, transform_indices = @transform_4, window_bounds = array<i64: 1, 4>}, {transform_indices = @transform_5, window_bounds = array<i64: 8, 2>}, {transform_indices = @transform_6, window_bounds = array<i64: 8, 2>}, {transform_indices = @transform_7, window_bounds = array<i64: 1, 1>}]} {
    %c0 = arith.constant 0 : index
    %c0_0 = arith.constant 0 : index
    %0 = vector.load %arg1[%c0, %c0_0] : memref<8x64xf32, #tpu.memory_space<vmem>>, vector<8x64xf32>
    %1 = arith.truncf %0 : vector<8x64xf32> to vector<8x64xbf16>
    %c0_1 = arith.constant 0 : index
    %c0_2 = arith.constant 0 : index
    %2 = vector.load %arg2[%c0_1, %c0_2] : memref<64x128xbf16, #tpu.memory_space<vmem>>, vector<64x128xbf16>
    %cst = arith.constant dense<0.000000e+00> : vector<8x128xf32>
    %3 = tpu.matmul %1, %2, %cst {dimension_numbers = #tpu.dot_dimension_numbers<[1], [0], [0], [1], [0, 0, 1, 1], [], []>} : vector<8x64xbf16>, vector<64x128xbf16>, vector<8x128xf32> -> vector<8x128xf32>
    %c0_3 = arith.constant 0 : index
    %c0_4 = arith.constant 0 : index
    %4 = vector.load %arg3[%c0_3, %c0_4] : memref<1x128xf32, #tpu.memory_space<vmem>>, vector<1x128xf32>
    %5 = vector.broadcast %4 : vector<1x128xf32> to vector<8x128xf32>
    %6 = arith.addf %3, %5 : vector<8x128xf32>
    %cst_5 = arith.constant 0.000000e+00 : f32
    %7 = vector.broadcast %cst_5 : f32 to vector<8x128xf32>
    %8 = arith.maximumf %6, %7 : vector<8x128xf32>
    %c0_6 = arith.constant 0 : index
    %c0_7 = arith.constant 0 : index
    %9 = vector.load %arg4[%c0_6, %c0_7] : memref<128x4xf32, #tpu.memory_space<vmem>>, vector<128x4xf32>
    %cst_8 = arith.constant dense<0.000000e+00> : vector<8x4xf32>
    %10 = tpu.matmul %8, %9, %cst_8 {dimension_numbers = #tpu.dot_dimension_numbers<[1], [0], [0], [1], [0, 0, 1, 1], [], []>} : vector<8x128xf32>, vector<128x4xf32>, vector<8x4xf32> -> vector<8x4xf32>
    %c0_9 = arith.constant 0 : index
    %c0_10 = arith.constant 0 : index
    %11 = vector.load %arg5[%c0_9, %c0_10] : memref<1x4xf32, #tpu.memory_space<vmem>>, vector<1x4xf32>
    %12 = vector.broadcast %11 : vector<1x4xf32> to vector<8x4xf32>
    %13 = arith.addf %10, %12 : vector<8x4xf32>
    %14 = vector.extract_strided_slice %13 {offsets = [0, 0], sizes = [8, 2], strides = [1, 1]} : vector<8x4xf32> to vector<8x2xf32>
    %15 = vector.extract_strided_slice %13 {offsets = [0, 2], sizes = [8, 2], strides = [1, 1]} : vector<8x4xf32> to vector<8x2xf32>
    %cst_11 = arith.constant 5.000000e-01 : f32
    %16 = vector.broadcast %cst_11 : f32 to vector<8x2xf32>
    %17 = arith.mulf %16, %15 : vector<8x2xf32>
    %18 = math.exp %17 : vector<8x2xf32>
    %c8_i32 = arith.constant 8 : i32
    %19 = arith.muli %arg0, %c8_i32 : i32
    %20 = tpu.iota {dimensions = array<i32: 0>} : vector<8x1xi32>
    %21 = vector.broadcast %19 : i32 to vector<8x1xi32>
    %22 = arith.addi %21, %20 : vector<8x1xi32>
    %cst_12 = arith.constant 1.000000e+00 : f32
    %23 = vector.broadcast %cst_12 : f32 to vector<8x2xf32>
    %24 = arith.addf %23, %15 : vector<8x2xf32>
    %25 = arith.mulf %14, %14 : vector<8x2xf32>
    %26 = arith.subf %24, %25 : vector<8x2xf32>
    %27 = arith.mulf %18, %18 : vector<8x2xf32>
    %28 = arith.subf %26, %27 : vector<8x2xf32>
    %c8_i32_13 = arith.constant 8 : i32
    %29 = vector.broadcast %c8_i32_13 : i32 to vector<8x1xi32>
    %30 = arith.cmpi slt, %22, %29 : vector<8x1xi32>
    %cst_14 = arith.constant 0.000000e+00 : f32
    %31 = vector.shape_cast %30 : vector<8x1xi1> to vector<8x1xi1>
    %32 = vector.broadcast %31 : vector<8x1xi1> to vector<8x2xi1>
    %33 = vector.broadcast %cst_14 : f32 to vector<8x2xf32>
    %34 = arith.select %32, %28, %33 : vector<8x2xi1>, vector<8x2xf32>
    %35 = vector.shape_cast %34 : vector<8x2xf32> to vector<1x8x2xf32>
    %cst_15 = arith.constant dense<0.000000e+00> : vector<1xf32>
    %36 = vector.multi_reduction <add>, %35, %cst_15 [1, 2] : vector<1x8x2xf32> to vector<1xf32>
    %37 = vector.shape_cast %36 : vector<1xf32> to vector<1x1x1xf32>
    %38 = vector.extract %37[0, 0, 0] : f32 from vector<1x1x1xf32>
    %cst_16 = arith.constant -5.000000e-01 : f32
    %39 = arith.mulf %cst_16, %38 : f32
    %c0_17 = arith.constant 0 : index
    %c0_18 = arith.constant 0 : index
    %40 = memref.load %arg8[%c0_17, %c0_18] : memref<1x1xf32, #tpu.memory_space<smem>>
    memref.store %39, %arg8[%c0_17, %c0_18] : memref<1x1xf32, #tpu.memory_space<smem>>
    %c0_19 = arith.constant 0 : index
    %c0_20 = arith.constant 0 : index
    %41 = vector.load %arg6[%c0_19, %c0_20] : memref<8x2xf32, #tpu.memory_space<vmem>>, vector<8x2xf32>
    %42 = arith.mulf %18, %41 : vector<8x2xf32>
    %43 = arith.addf %14, %42 : vector<8x2xf32>
    %c0_21 = arith.constant 0 : index
    %c0_22 = arith.constant 0 : index
    %44 = vector.load %arg7[%c0_21, %c0_22] : memref<8x2xf32, #tpu.memory_space<vmem>>, vector<8x2xf32>
    tpu.vector_store %arg7[%c0_21, %c0_22], %43 {strides = array<i32>} : memref<8x2xf32, #tpu.memory_space<vmem>>, vector<8x2xf32>,
    return
  }
  func.func @transform_0(%arg0: i32) -> (i32, i32) {
    %c0_i32 = arith.constant 0 : i32
    %c0_i32_0 = arith.constant 0 : i32
    return %arg0, %c0_i32 : i32, i32
  }
  func.func @transform_1(%arg0: i32) -> (i32, i32) {
    %c0_i32 = arith.constant 0 : i32
    %c0_i32_0 = arith.constant 0 : i32
    %c0_i32_1 = arith.constant 0 : i32
    return %c0_i32, %c0_i32_0 : i32, i32
  }
  func.func @transform_2(%arg0: i32) -> (i32, i32) {
    %c0_i32 = arith.constant 0 : i32
    %c0_i32_0 = arith.constant 0 : i32
    %c0_i32_1 = arith.constant 0 : i32
    return %c0_i32, %c0_i32_0 : i32, i32
  }
  func.func @transform_3(%arg0: i32) -> (i32, i32) {
    %c0_i32 = arith.constant 0 : i32
    %c0_i32_0 = arith.constant 0 : i32
    %c0_i32_1 = arith.constant 0 : i32
    return %c0_i32, %c0_i32_0 : i32, i32
  }
  func.func @transform_4(%arg0: i32) -> (i32, i32) {
    %c0_i32 = arith.constant 0 : i32
    %c0_i32_0 = arith.constant 0 : i32
    %c0_i32_1 = arith.constant 0 : i32
    return %c0_i32, %c0_i32_0 : i32, i32
  }
  func.func @transform_5(%arg0: i32) -> (i32, i32) {
    %c0_i32 = arith.constant 0 : i32
    %c0_i32_0 = arith.constant 0 : i32
    return %arg0, %c0_i32 : i32, i32
  }
  func.func @transform_6(%arg0: i32) -> (i32, i32) {
    %c0_i32 = arith.constant 0 : i32
    %c0_i32_0 = arith.constant 0 : i32
    return %arg0, %c0_i32 : i32, i32
  }
  func.func @transform_7(%arg0: i32) -> (i32, i32) {
    %c0_i32 = arith.constant 0 : i32
    %c0_i32_0 = arith.constant 0 : i32
    return %arg0, %c0_i32 : i32, i32
  }
}

</mosaic_0001>

<bundles_post_ra>
// kernel: encoder_forward.1
= control target key start
LH: loop header
LB: loop body
LE: loop exit
PB: predicated region body
PF: predicated region fallthrough
CT: control target
= control target key end

     0   :  { %v373_v1 = vmov 0.0   ;;  %vm374_vm0 = vmmov 0   ;;  %s520_s0 = inlined_call_operand.vmem [shape: f32[8,64], index: 0, kind: input, shape index: {}]   ;;  %s521_s1 = inlined_call_operand.vmem [shape: bf16[64,128], index: 1, kind: input, shape index: {}]   ;;  %s522_s2 = inlined_call_operand.vmem [shape: f32[1,128], index: 2, kind: input, shape index: {}]   ;;  %s523_s3 = inlined_call_operand.vmem [shape: f32[128,4], index: 3, kind: input, shape index: {}]   ;;  %s524_s4 = inlined_call_operand.vmem [shape: f32[1,4], index: 4, kind: input, shape index: {}]   ;;  %s525_s5 = inlined_call_operand.vmem [shape: f32[8,2], index: 5, kind: input, shape index: {}]   ;;  %s526_s6 = inlined_call_operand.vmem [shape: f32[8,2], index: 6, kind: output, shape index: {0}]   ;;  %s527_s7 = inlined_call_operand.hbm [shape: f32[1,1], index: 7, kind: output, shape index: {1}]  }
   0x1   :  { %v357_v0 = vld [vmem:[%s521_s1 + $0x18] sm:$0xff]   ;;  %303 = vmatprep.subr.bf16.mxu0 %v373_v1  ;;  %315 = vmatprep.subr.mxu1 %v373_v1  ;;  %v358_v2 = vld [vmem:[%s521_s1 + $0x10] sm:$0xff]   ;;  %v359_v5 = vld [vmem:[%s521_s1 + $0x8] sm:$0xff]  }
   0x2   :  { %304 = vmatpush3.bf16.msra.mxu0 %v357_v0  ;;  %311 = vmatprep.mubr.msk.bf16.mxu0 %vm374_vm0, %v373_v1  ;;  %v128_v3 = vld [vmem:[%s523_s3 + $0x78] sm:$0xff]  ;;  %v127_v4 = vld [vmem:[%s523_s3 + $0x70] sm:$0xff]  ;;  %v126_v6 = vld [vmem:[%s523_s3 + $0x68] sm:$0xff] }
   0x3   :  { %305 = vmatprep.subr.bf16.mxu0 %v373_v1  ;;  %347 = vmatprep.mubr.msk.f32.mxu1 %vm374_vm0, %v373_v1  ;;  %v125_v7 = vld [vmem:[%s523_s3 + $0x60] sm:$0xff] }
   0x4   :  { %316 = vmatpush3.msra.mxu1 %v128_v3 }
   0x5   :  { %317 = vmatprep.subr.mxu1 %v373_v1 }
   0x6   :  { %306 = vmatpush3.bf16.msra.mxu0 %v358_v2  ;;  %318 = vmatpush3.msra.mxu1 %v127_v4 }
   0x7   :  { %307 = vmatprep.subr.bf16.mxu0 %v373_v1  ;;  %319 = vmatprep.subr.mxu1 %v373_v1 }
   0x8   :  { %320 = vmatpush3.msra.mxu1 %v126_v6 }
   0x9   :  { %13 = vsyncpa [#allocation3], 0  ;;  %v360_v8 = vld [vmem:[%s521_s1] sm:$0xff]   ;;  %321 = vmatprep.subr.mxu1 %v373_v1  ;;  %v124_v10 = vld [vmem:[%s523_s3 + $0x58] sm:$0xff]  ;;  %vm68_vm1 = vcmask 523264   ;;  %vm231_vm2 = vcmask 15360  }
   0xa   :  { %308 = vmatpush3.bf16.msra.mxu0 %v359_v5  ;;  %v27_v9 = vld [vmem:[%s520_s0] sm:$0xff]  ;;  %322 = vmatpush3.msra.mxu1 %v125_v7  ;;  %v123_v11 = vld [vmem:[%s523_s3 + $0x50] sm:$0xff]  ;;  %v122_v13 = vld [vmem:[%s523_s3 + $0x48] sm:$0xff]  ;;  %s377_s23 = smov [#allocation2]  }
   0xb   :  { %309 = vmatprep.subr.bf16.mxu0 %v373_v1  ;;  %323 = vmatprep.subr.mxu1 %v373_v1  ;;  %v28_v12 = vpack.c.bf16 %v27_v9, %v27_v9  ;;  %v121_v14 = vld [vmem:[%s523_s3 + $0x40] sm:$0xff]  ;;  %v120_v15 = vld [vmem:[%s523_s3 + $0x38] sm:$0xff]  ;;  %v119_v16 = vld [vmem:[%s523_s3 + $0x30] sm:$0xff] }
   0xc   :  { %324 = vmatpush3.msra.mxu1 %v124_v10  ;;  %v118_v17 = vld [vmem:[%s523_s3 + $0x28] sm:$0xff]  ;;  %v117_v18 = vld [vmem:[%s523_s3 + $0x20] sm:$0xff]  ;;  %v116_v19 = vld [vmem:[%s523_s3 + $0x18] sm:$0xff] }
   0xd   :  { %325 = vmatprep.subr.mxu1 %v373_v1  ;;  %v115_v20 = vld [vmem:[%s523_s3 + $0x10] sm:$0xff]  ;;  %v114_v21 = vld [vmem:[%s523_s3 + $0x8] sm:$0xff]  ;;  %v113_v22 = vld [vmem:[%s523_s3] sm:$0xff]  ;;  %s375_s3 = smov 2  }
   0xe   :  { %310 = vmatpush3.bf16.msra.mxu0 %v360_v8  ;;  %326 = vmatpush3.msra.mxu1 %v123_v11  ;;  %v274_v23 = vld [vmem:[%s522_s2] ss:$0 sm:$0xff]  ;;  %s376_s2 = smov 126  }
   0xf   :  { %327 = vmatprep.subr.mxu1 %v373_v1  ;;  %v280_v30 = vld [vmem:[%s524_s4] ss:$0 sm:$0xff] }
  0x10   :  { %328 = vmatpush3.msra.mxu1 %v122_v13  ;;  %v245_v45 = vld [vmem:[%s525_s5] sm:$0xff] }
  0x11   :  { %312 = vmatmul.mubr.msk.bf16.vlgmr.msra.gmra.mxu0 %vm68_vm1, %v28_v12  ;;  %329 = vmatprep.subr.mxu1 %v373_v1 }
  0x12   :  { %330 = vmatpush3.msra.mxu1 %v121_v14 }
  0x13   :  { %331 = vmatprep.subr.mxu1 %v373_v1 }
  0x14   :  { %332 = vmatpush3.msra.mxu1 %v120_v15 }
  0x15   :  { %333 = vmatprep.subr.mxu1 %v373_v1 }
  0x16   :  { %334 = vmatpush3.msra.mxu1 %v119_v16 }
  0x17   :  { %335 = vmatprep.subr.mxu1 %v373_v1 }
  0x18   :  { %336 = vmatpush3.msra.mxu1 %v118_v17 }
  0x19   :  { %337 = vmatprep.subr.mxu1 %v373_v1 }
  0x1a   :  { %338 = vmatpush3.msra.mxu1 %v117_v18 }
  0x1b   :  { %339 = vmatprep.subr.mxu1 %v373_v1 }
  0x1c   :  { %340 = vmatpush3.msra.mxu1 %v116_v19 }
  0x1d   :  { %341 = vmatprep.subr.mxu1 %v373_v1 }
  0x1e   :  { %342 = vmatpush3.msra.mxu1 %v115_v20 }
  0x1f   :  { %343 = vmatprep.subr.mxu1 %v373_v1 }
  0x20   :  { %344 = vmatpush3.msra.mxu1 %v114_v21 }
  0x21   :  { %345 = vmatprep.subr.mxu1 %v373_v1 }
  0x22   :  { %346 = vmatpush3.msra.mxu1 %v113_v22 }
  0xd1   :  { %v106_v24 = vpop.f32.mrf.mxu0 }
  0xd2   :  { %v107_v25 = vadd.f32 %v274_v23, %v106_v24 }
  0xd3   :  { %v313_v26 = vpop.f32.mrf.mxu0 }
  0xd4   :  { %v112_v27 = vmax.f32 %v107_v25, 0.0 }
  0xd5   :  { %v109_v28 = vpop.f32.mrf.mxu0 }
  0xd6   :  { %348 = vmatmul.mubr.f32.vlgmr.msra.gmra.mxu1 %v112_v27 }
  0xd7   :  { %v314_v29 = vpop.f32.mrf.mxu0 }
 0x196   :  { %v202_v31 = vpop.f32.mrf.mxu1 }
 0x197   :  { %v203_v32 = vadd.f32 %v280_v30, %v202_v31 }
 0x198   :  { %v349_v33 = vpop.f32.mrf.mxu1 }
 0x199   :  { %v215_v34 = vmul.f32 %v203_v32, %v203_v32  ;;  %v206_v35 = vmul.f32 0.5, %v203_v32  ;;  %v214_v38 = vadd.f32 1.0, %v203_v32 }
 0x19b   :  { %217 = vrot.lane.b32.xlu0 %v215_v34, %s375_s3  ;;  %v207_v36 = vmul.f32 1.442695, %v206_v35 }
 0x19d   :  { %361 = vpow2.f32 %v207_v36 }
 0x1aa   :  { %v362_v37 = vpop.eup %361 }
 0x1ab   :  { %v221_v41 = vmul.f32 %v362_v37, %v362_v37 }
 0x20d   :  { %v218_v39 = vpop.permute.xlu0 %217 }
 0x20e   :  { %v220_v40 = vsub.f32 %v214_v38, %v218_v39 }
 0x210   :  { %v222_v42 = vsub.f32 %v220_v40, %v221_v41 }
 0x212   :  { %228 = vrot.lane.b32.xlu0 %v222_v42, %s376_s2 }
 0x284   :  { %v229_v43 = vpop.permute.xlu0 %228 }
 0x285   :  { %v232_v44 = vsel %vm231_vm2, %v229_v43, 0.0 }
 0x286   :  { %233 = vadd.xlane.f32.xlu1 %v232_v44 }
 0x297   :  { %247 = vrot.lane.b32.xlu1 %v245_v45, %s375_s3 }
 0x30f   :  { %v234_v46 = vpop.xlane.xlu1 %233 }
 0x310   :  { %v235_v47 = vrot.slane %v234_v46, 4 }
 0x312   :  { %v236_v48 = vadd.f32 %v235_v47, %v234_v46 }
 0x313   :  { %v248_v49 = vpop.permute.xlu1 %247 }
 0x314   :  { %v237_v50 = vrot.slane %v236_v48, 2  ;;  %v250_v51 = vmul.f32 %v362_v37, %v248_v49 }
 0x316   :  { %252 = vrot.lane.b32.xlu0 %v250_v51, %s376_s2  ;;  %v238_v52 = vadd.f32 %v237_v50, %v236_v48 }
 0x318   :  { %v239_v53 = vrot.slane %v238_v52, 1 }
 0x31a   :  { %v240_v54 = vadd.f32 %v239_v53, %v238_v52 }
 0x31c   :  { %350 = vpush %v240_v54 }
 0x34d   :  { %s351_s0 = spop %350 }
 0x34e   :  { %s242_s1 = smul.f32 -0.5, %s351_s0 }
 0x350   :  { %244 = sst [smem:[#allocation2]] %s242_s1 }
 0x351   :  { %266 = dma.smem_to_hbm %s377_s23, 16, %s527_s7, [#allocation3]  }
 0x388   :  { %v253_v55 = vpop.permute.xlu0 %252 }
 0x389   :  { %v255_v56 = vadd.f32 %v253_v55, %v203_v32 }
 0x38b   :  { %256 = vst.msk [vmem:[%s526_s6] sm:$0xff] %vm231_vm2, %v255_v56 }
 0x38c   :  { %371 = dma.done.wait [#allocation3], 16  }
 0x38d   :  { %372 = vsyncadd [#allocation3], 4294967280 }
 0x38e   :  { %272 = sfence }
 0x38f   :  { %273 = vsyncpa [#allocation3], 1 }

</bundles_post_ra>
